<compile_context>
chip_gen: v7x
topology: tpu7x:2x2x1
jax: 0.10.0
libtpu: 0.0.40
codegen_flags: <defaults>
</compile_context>

<pallas_src>
import functools

import jax
import jax.numpy as jnp
from jax.experimental import pallas as pl
from jax.experimental.pallas import tpu as pltpu

HEAD_PAD = 128  # merged dueling head padded to a full lane-width output tile


# ----------------------------------------------------------------------------
# Shape helpers
# ----------------------------------------------------------------------------

def _conv_out(s, k, st):
    return (s - k) // st + 1


def _derive_dims(h, w):
    h1, w1 = _conv_out(h, 4, 4), _conv_out(w, 4, 4)     # conv1 k=4 s=4
    h2, w2 = h1 // 2, w1 // 2                           # conv2 k=2 s=2
    h3, w3 = h2 - 1, w2 - 1                             # conv3 k=2 s=1
    hp, wp = h3 // 2, w3 // 2                           # maxpool k=2 s=2 (floor)
    return h1, w1, h2, w2, h3, w3, hp, wp


# ----------------------------------------------------------------------------
# The fused Pallas kernel
# ----------------------------------------------------------------------------

def _ddqn_fused_kernel(p1_ref, w1c_ref, b1_ref, w2t_ref, b2_ref,
                       w3a_ref, b3_ref, w1l_ref, b1l_ref,
                       w2l_ref, b2l_ref, wh_ref, bh_ref,
                       o_ref, t_ref, *, tb, m2, w2_sp, hp, wp):
    """Whole DDQN forward for one batch tile (tb samples), all VMEM-resident.

    Row layouts (chosen on the host so every access below is a contiguous,
    static slice -- no in-kernel gather/transpose/reshape):
      p1_ref[0] : (4*tb*m2, C*16)  rows = (q = conv2 tap parity, h2, w2, n)
      y1/y2/t   : (tb*m2, ...)     rows = (h2, w2, n)   [spatial-major]
      tail      : (tb, ...)        rows = n
    """
    tbm2 = tb * m2

    # ---- conv1 (k=4, s=4): one GEMM over all four parity groups ------------
    p1 = p1_ref[0]                                            # (4*tbm2, C*16)
    y1 = jnp.dot(p1, w1c_ref[...], preferred_element_type=jnp.float32)
    y1 = jnp.maximum(y1 + b1_ref[...], 0.0).astype(jnp.bfloat16)

    # ---- conv2 (k=2, s=2): 4 accumulated tap GEMMs over contiguous q-blocks
    acc = jnp.dot(y1[0:tbm2], w2t_ref[0], preferred_element_type=jnp.float32)
    for q in range(1, 4):
        acc = acc + jnp.dot(y1[q * tbm2:(q + 1) * tbm2], w2t_ref[q],
                            preferred_element_type=jnp.float32)
    y2 = jnp.maximum(acc + b2_ref[...], 0.0).astype(jnp.bfloat16)  # (tbm2, 64)

    # ---- conv3 (k=2, s=1): ONE GEMM against all four taps at once ----------
    # column block o*64:(o+1)*64 holds tap (kh, kw) with o = 2*kh + kw.
    t_ref[...] = jnp.dot(y2, w3a_ref[...], preferred_element_type=jnp.float32)

    def conv3_rows(r):
        """conv3 output (pre-bias) at flat spatial position r, all tb samples."""
        return (t_ref[r * tb:(r + 1) * tb, 0:64]
                + t_ref[(r + 1) * tb:(r + 2) * tb, 64:128]
                + t_ref[(r + w2_sp) * tb:(r + w2_sp + 1) * tb, 128:192]
                + t_ref[(r + w2_sp + 1) * tb:(r + w2_sp + 2) * tb, 192:256])

    # ---- 2x2/s2 max-pool fused with flatten + line1 -------------------------
    # (bias commutes with max; accumulated GEMMs over the Hp*Wp pool positions)
    h1 = None
    for ph in range(hp):
        for pw in range(wp):
            base = (2 * ph) * w2_sp + 2 * pw
            pooled = jnp.maximum(
                jnp.maximum(conv3_rows(base), conv3_rows(base + 1)),
                jnp.maximum(conv3_rows(base + w2_sp),
                            conv3_rows(base + w2_sp + 1)))
            pooled = (pooled + b3_ref[...]).astype(jnp.bfloat16)    # (tb, 64)
            part = jnp.dot(pooled, w1l_ref[ph * wp + pw],
                           preferred_element_type=jnp.float32)
            h1 = part if h1 is None else h1 + part
    h1 = jnp.maximum(h1 + b1l_ref[...], 0.0).astype(jnp.bfloat16)   # (tb, 512)

    # ---- line2 + ReLU, merged (128-padded) value|advantage head ------------
    h2 = jnp.dot(h1, w2l_ref[...], preferred_element_type=jnp.float32)
    h2 = jnp.maximum(h2 + b2l_ref[...], 0.0).astype(jnp.bfloat16)   # (tb, 256)
    o_ref[...] = (jnp.dot(h2, wh_ref[...], preferred_element_type=jnp.float32)
                  + bh_ref[...])


# ----------------------------------------------------------------------------
# One-time parameter repacking into the kernel's GEMM layouts
# ----------------------------------------------------------------------------

def pack_params(p, input_dim):
    """Repack PyTorch-layout parameters: tap-split convs, pool-position-split
    line1, merged+lane-padded dueling head.  Runs once per network."""
    _, h, w = input_dim
    *_, hp, wp = _derive_dims(h, w)

    w1c = p['conv1_w'].reshape(32, -1).T.astype(jnp.bfloat16)         # (C*16,32)
    w2t = jnp.transpose(p['conv2_w'], (2, 3, 1, 0)).reshape(4, 32, 64)
    w2t = w2t.astype(jnp.bfloat16)                                    # (4,32,64)
    w3a = jnp.transpose(p['conv3_w'], (1, 2, 3, 0)).reshape(64, 4 * 64)
    w3a = w3a.astype(jnp.bfloat16)                                    # (64,256)

    # torch flattens the pooled NCHW tensor as (c, hp, wp); regroup line1's
    # columns pool-position-major so the kernel accumulates one (64,512) GEMM
    # per pool position.
    w1l = p['line1_w'].reshape(512, 64, hp, wp)
    w1l = jnp.transpose(w1l, (2, 3, 1, 0)).reshape(hp * wp, 64, 512)
    w1l = w1l.astype(jnp.bfloat16)
    w2l = p['line2_w'].T.astype(jnp.bfloat16)                         # (512,256)

    head_w = jnp.concatenate([p['value_w'], p['adv_w']], axis=0)      # (1+A,256)
    head_b = jnp.concatenate([p['value_b'], p['adv_b']], axis=0)
    nh = head_w.shape[0]
    assert nh <= HEAD_PAD, "too many actions for a single 128-lane head tile"
    wh = jnp.zeros((HEAD_PAD, head_w.shape[1]), jnp.float32).at[:nh].set(head_w)
    wh = wh.T.astype(jnp.bfloat16)                                    # (256,128)
    bh = jnp.zeros((1, HEAD_PAD), jnp.float32).at[0, :nh].set(head_b)

    row = lambda b: b.reshape(1, -1).astype(jnp.float32)
    return dict(w1c=w1c, b1=row(p['conv1_b']),
                w2t=w2t, b2=row(p['conv2_b']),
                w3a=w3a, b3=row(p['conv3_b']),
                w1l=w1l, b1l=row(p['line1_b']),
                w2l=w2l, b2l=row(p['line2_b']),
                wh=wh, bh=bh)


# ----------------------------------------------------------------------------
# Pallas forward
# ----------------------------------------------------------------------------

def ddqn_forward_pallas(packed, x, *, n_actions):
    """(value, advantage) = DDQN(x) via one fused Pallas kernel."""
    N, C, H, W = x.shape
    _, _, H2, W2, H3, W3, Hp, Wp = _derive_dims(H, W)
    assert H3 >= 2 and W3 >= 2, "input spatially too small for conv3 + maxpool"
    M2, K1 = H2 * W2, C * 16

    # Batch tile: full batch when small; 8-sample tiles (pipelined and
    # megacore-"parallel" on v7x) once the batch grows.
    TB = N if (N <= 8 or N % 8 != 0) else 8
    G = N // TB

    # conv1 im2col (k==stride -> pure space-to-depth), laid out so every
    # in-kernel access is a contiguous static slice:
    #   batch tile | conv2-tap parity q=(s,t) | (h2,w2) | n | (c,kh,kw)
    # Single XLA transpose of the bf16-cast input (same byte count as x).
    # TODO(synk): fold this transpose into the kernel's input DMA (strided
    # BlockSpec over 4-row strips) to avoid the extra HBM read+write of x.
    xb = x[:, :, :8 * H2, :8 * W2].astype(jnp.bfloat16)
    xb = xb.reshape(G, TB, C, H2, 2, 4, W2, 2, 4)
    p1 = jnp.transpose(xb, (0, 4, 7, 3, 6, 1, 2, 5, 8))
    p1 = p1.reshape(G, 4 * TB * M2, K1)

    kernel = functools.partial(_ddqn_fused_kernel, tb=TB, m2=M2, w2_sp=W2,
                               hp=Hp, wp=Wp)

    def _w_spec(arr):  # grid-invariant full-extent block (stays VMEM-resident)
        nd = arr.ndim
        return pl.BlockSpec(arr.shape, lambda i, _nd=nd: (0,) * _nd)

    weights = (packed['w1c'], packed['b1'], packed['w2t'], packed['b2'],
               packed['w3a'], packed['b3'], packed['w1l'], packed['b1l'],
               packed['w2l'], packed['b2l'], packed['wh'], packed['bh'])

    out = pl.pallas_call(
        kernel,
        out_shape=jax.ShapeDtypeStruct((N, HEAD_PAD), jnp.float32),
        grid=(G,),
        in_specs=[pl.BlockSpec((1, 4 * TB * M2, K1), lambda i: (i, 0, 0))]
                 + [_w_spec(a) for a in weights],
        out_specs=pl.BlockSpec((TB, HEAD_PAD), lambda i: (i, 0)),
        scratch_shapes=[pltpu.VMEM((TB * M2, 4 * 64), jnp.float32)],
        compiler_params=pltpu.CompilerParams(
            dimension_semantics=("parallel",)),
    )(p1, *weights)

    return out[:, :1], out[:, 1:1 + n_actions]


# ----------------------------------------------------------------------------
# Parameter construction (deterministic, shapes follow DDQN.__init__)
# ----------------------------------------------------------------------------

def _kaiming_normal_fan_out(key, shape):
    fan_out = shape[0] * shape[2] * shape[3]
    std = (2.0 / fan_out) ** 0.5
    return std * jax.random.normal(key, shape, dtype=jnp.float32)


def _uniform_fan_in(key, shape, fan_in):
    bound = 1.0 / (fan_in ** 0.5)
    return jax.random.uniform(key, shape, minval=-bound, maxval=bound,
                              dtype=jnp.float32)


def _noisy_effective(key, in_f, out_f, sigma=0.5):
    """Effective (weight, bias) of a training-mode factorized NoisyNet layer."""
    bound = in_f ** (-0.5)
    k_mw, k_mb, k_ein, k_eout = jax.random.split(key, 4)
    mu_w = jax.random.uniform(k_mw, (out_f, in_f), minval=-bound, maxval=bound,
                              dtype=jnp.float32)
    mu_b = jax.random.uniform(k_mb, (out_f,), minval=-bound, maxval=bound,
                              dtype=jnp.float32)
    sig_w = jnp.full((out_f, in_f), sigma * bound, dtype=jnp.float32)
    sig_b = jnp.full((out_f,), sigma * bound, dtype=jnp.float32)
    f = lambda e: jnp.sign(e) * jnp.sqrt(jnp.abs(e))
    f_in = f(jax.random.normal(k_ein, (in_f,), dtype=jnp.float32))
    f_out = f(jax.random.normal(k_eout, (out_f,), dtype=jnp.float32))
    w_eff = sig_w * jnp.outer(f_out, f_in) + mu_w
    b_eff = sig_b * f_out + mu_b
    return w_eff, b_eff


def init_ddqn_params(key, input_dim, output_dim=256, n_actions=12):
    c, h, w = input_dim
    ks = jax.random.split(key, 12)

    conv1_w = _kaiming_normal_fan_out(ks[0], (32, c, 4, 4))
    conv1_b = _uniform_fan_in(ks[1], (32,), c * 4 * 4)
    conv2_w = _kaiming_normal_fan_out(ks[2], (64, 32, 2, 2))
    conv2_b = _uniform_fan_in(ks[3], (64,), 32 * 2 * 2)
    conv3_w = _kaiming_normal_fan_out(ks[4], (64, 64, 2, 2))
    conv3_b = _uniform_fan_in(ks[5], (64,), 64 * 2 * 2)

    *_, hp, wp = _derive_dims(h, w)
    flat = 64 * hp * wp

    line1_w = _uniform_fan_in(ks[6], (512, flat), flat)
    line1_b = _uniform_fan_in(ks[7], (512,), flat)
    line2_w = _uniform_fan_in(ks[8], (output_dim, 512), 512)
    line2_b = _uniform_fan_in(ks[9], (output_dim,), 512)

    value_w, value_b = _noisy_effective(ks[10], output_dim, 1)
    adv_w, adv_b = _noisy_effective(ks[11], output_dim, n_actions)

    return dict(
        conv1_w=conv1_w, conv1_b=conv1_b,
        conv2_w=conv2_w, conv2_b=conv2_b,
        conv3_w=conv3_w, conv3_b=conv3_b,
        line1_w=line1_w, line1_b=line1_b,
        line2_w=line2_w, line2_b=line2_b,
        value_w=value_w, value_b=value_b,
        adv_w=adv_w, adv_b=adv_b,
    )


# ----------------------------------------------------------------------------
# Pure-JAX reference (same bf16 operands / f32 accumulation as the kernel)
# ----------------------------------------------------------------------------

def _conv_ref(x, w, b, stride):
    y = jax.lax.conv_general_dilated(
        x.astype(jnp.bfloat16), w.astype(jnp.bfloat16),
        window_strides=(stride, stride), padding='VALID',
        dimension_numbers=('NCHW', 'OIHW', 'NCHW'),
        preferred_element_type=jnp.float32)
    return y + b[None, :, None, None]


def _lin_ref(a, w, b):
    return jnp.dot(a.astype(jnp.bfloat16), w.T.astype(jnp.bfloat16),
                   preferred_element_type=jnp.float32) + b


def ddqn_forward_ref(p, x):
    y = jax.nn.relu(_conv_ref(x, p['conv1_w'], p['conv1_b'], 4))
    y = jax.nn.relu(_conv_ref(y, p['conv2_w'], p['conv2_b'], 2))
    y = _conv_ref(y, p['conv3_w'], p['conv3_b'], 1)          # no ReLU after conv3
    y = jax.lax.reduce_window(y, -jnp.inf, jax.lax.max,
                              (1, 1, 2, 2), (1, 1, 2, 2), 'VALID')
    flat = y.reshape(y.shape[0], -1)
    h1 = jax.nn.relu(_lin_ref(flat, p['line1_w'], p['line1_b']))
    h2 = jax.nn.relu(_lin_ref(h1, p['line2_w'], p['line2_b']))
    return (_lin_ref(h2, p['value_w'], p['value_b']),
            _lin_ref(h2, p['adv_w'], p['adv_b']))


# ----------------------------------------------------------------------------
# Double Dueling DQN wrapper
# ----------------------------------------------------------------------------

class DDDQNPallas:
    """Double Dueling DQN: online + target nets, single fused Pallas forward."""

    def __init__(self, key, input_dim, output_dim=256, n_actions=12):
        online = init_ddqn_params(key, input_dim, output_dim, n_actions)
        # target_net.load_state_dict(online_net.state_dict()) -> identical params
        target = dict(online)
        self.params = {'online': online, 'target': target}
        self.packed = {m: pack_params(p, input_dim)
                       for m, p in self.params.items()}
        self._fwd = jax.jit(functools.partial(ddqn_forward_pallas,
                                              n_actions=n_actions))
        # TODO(synk): Adam optimizer, checkpoint save/load and per-forward
        # NoisyNet noise resampling are host-side training logic with no Pallas
        # equivalent; the noise is folded into effective weights once at init.

    def __call__(self, x, model='online'):
        return self._fwd(self.packed[model], x)


# ----------------------------------------------------------------------------
# main
# ----------------------------------------------------------------------------

def _check(net, x, n_actions, tol=1e-2):
    v, a = net(x, model='online')
    v = jax.block_until_ready(v)
    a = jax.block_until_ready(a)
    assert v.shape == (x.shape[0], 1), v.shape
    assert a.shape == (x.shape[0], n_actions), a.shape

    v_ref, a_ref = ddqn_forward_ref(net.params['online'], x)
    assert jnp.allclose(v, v_ref, atol=tol, rtol=tol), \
        float(jnp.max(jnp.abs(v - v_ref)))
    assert jnp.allclose(a, a_ref, atol=tol, rtol=tol), \
        float(jnp.max(jnp.abs(a - a_ref)))

    vt, at = net(x, model='target')          # target-net path also runs
    jax.block_until_ready(vt)
    jax.block_until_ready(at)


if __name__ == "__main__":
    key = jax.random.PRNGKey(0)
    k_p1, k_p2, k_x1, k_x2 = jax.random.split(key, 4)
    n_actions = 12

    # Smallest config surviving conv1(4,4)->conv2(2,2)->conv3(2,1)->pool(2):
    # 32x32 input, pooled feature map 1x1 (flat = 64).
    x_small = jax.random.normal(k_x1, (2, 4, 32, 32), dtype=jnp.float32)
    net_small = DDDQNPallas(k_p1, input_dim=(4, 32, 32), output_dim=256,
                            n_actions=n_actions)
    _check(net_small, x_small, n_actions)

    # Larger spatial config exercising the multi-pool-position flatten path
    # (accumulated line1 GEMMs): 48x48 input, pooled map 2x2 (flat = 256).
    x_large = jax.random.normal(k_x2, (2, 4, 48, 48), dtype=jnp.float32)
    net_large = DDDQNPallas(k_p2, input_dim=(4, 48, 48), output_dim=256,
                            n_actions=n_actions)
    _check(net_large, x_large, n_actions)

    print("KERNEL_OK")
</pallas_src>

<mosaic_0001>
module attributes {stable_mosaic.version = 11 : i64} {
  func.func @_ddqn_fused_kernel(%arg0: i32, %arg1: memref<1x128x64xbf16, #tpu.memory_space<vmem>>, %arg2: memref<64x32xbf16, #tpu.memory_space<vmem>>, %arg3: memref<1x32xf32, #tpu.memory_space<vmem>>, %arg4: memref<4x32x64xbf16, #tpu.memory_space<vmem>>, %arg5: memref<1x64xf32, #tpu.memory_space<vmem>>, %arg6: memref<64x256xbf16, #tpu.memory_space<vmem>>, %arg7: memref<1x64xf32, #tpu.memory_space<vmem>>, %arg8: memref<1x64x512xbf16, #tpu.memory_space<vmem>>, %arg9: memref<1x512xf32, #tpu.memory_space<vmem>>, %arg10: memref<512x256xbf16, #tpu.memory_space<vmem>>, %arg11: memref<1x256xf32, #tpu.memory_space<vmem>>, %arg12: memref<256x128xbf16, #tpu.memory_space<vmem>>, %arg13: memref<1x128xf32, #tpu.memory_space<vmem>>, %arg14: memref<2x128xf32, #tpu.memory_space<vmem>>, %arg15: memref<32x256xf32, #tpu.memory_space<vmem>>) attributes {dimension_semantics = [#tpu.dimension_semantics<parallel>], iteration_bounds = array<i64: 1>, scalar_prefetch = 0 : i64, scratch_operands = 1 : i64, tpu.core_type = #tpu.core_type<tc>, window_params = [{transform_indices = @transform_0, window_bounds = array<i64: 1, 128, 64>}, {pipeline_mode = #tpu.pipeline_mode<synchronous>, transform_indices = @transform_1, window_bounds = array<i64: 64, 32>}, {pipeline_mode = #tpu.pipeline_mode<synchronous>, transform_indices = @transform_2, window_bounds = array<i64: 1, 32>}, {pipeline_mode = #tpu.pipeline_mode<synchronous>, transform_indices = @transform_3, window_bounds = array<i64: 4, 32, 64>}, {pipeline_mode = #tpu.pipeline_mode<synchronous>, transform_indices = @transform_4, window_bounds = array<i64: 1, 64>}, {pipeline_mode = #tpu.pipeline_mode<synchronous>, transform_indices = @transform_5, window_bounds = array<i64: 64, 256>}, {pipeline_mode = #tpu.pipeline_mode<synchronous>, transform_indices = @transform_6, window_bounds = array<i64: 1, 64>}, {pipeline_mode = #tpu.pipeline_mode<synchronous>, transform_indices = @transform_7, window_bounds = array<i64: 1, 64, 512>}, {pipeline_mode = #tpu.pipeline_mode<synchronous>, transform_indices = @transform_8, window_bounds = array<i64: 1, 512>}, {pipeline_mode = #tpu.pipeline_mode<synchronous>, transform_indices = @transform_9, window_bounds = array<i64: 512, 256>}, {pipeline_mode = #tpu.pipeline_mode<synchronous>, transform_indices = @transform_10, window_bounds = array<i64: 1, 256>}, {pipeline_mode = #tpu.pipeline_mode<synchronous>, transform_indices = @transform_11, window_bounds = array<i64: 256, 128>}, {pipeline_mode = #tpu.pipeline_mode<synchronous>, transform_indices = @transform_12, window_bounds = array<i64: 1, 128>}, {transform_indices = @transform_13, window_bounds = array<i64: 2, 128>}]} {
    %c0 = arith.constant 0 : index
    %c0_0 = arith.constant 0 : index
    %c0_1 = arith.constant 0 : index
    %0 = vector.load %arg1[%c0, %c0_0, %c0_1] : memref<1x128x64xbf16, #tpu.memory_space<vmem>>, vector<1x128x64xbf16>
    %1 = vector.shape_cast %0 : vector<1x128x64xbf16> to vector<128x64xbf16>
    %c0_2 = arith.constant 0 : index
    %c0_3 = arith.constant 0 : index
    %2 = vector.load %arg2[%c0_2, %c0_3] : memref<64x32xbf16, #tpu.memory_space<vmem>>, vector<64x32xbf16>
    %cst = arith.constant dense<0.000000e+00> : vector<128x32xf32>
    %3 = tpu.matmul %1, %2, %cst {dimension_numbers = #tpu.dot_dimension_numbers<[1], [0], [0], [1], [0, 0, 1, 1], [], []>} : vector<128x64xbf16>, vector<64x32xbf16>, vector<128x32xf32> -> vector<128x32xf32>
    %c0_4 = arith.constant 0 : index
    %c0_5 = arith.constant 0 : index
    %4 = vector.load %arg3[%c0_4, %c0_5] : memref<1x32xf32, #tpu.memory_space<vmem>>, vector<1x32xf32>
    %5 = vector.broadcast %4 : vector<1x32xf32> to vector<128x32xf32>
    %6 = arith.addf %3, %5 : vector<128x32xf32>
    %cst_6 = arith.constant 0.000000e+00 : f32
    %7 = vector.broadcast %cst_6 : f32 to vector<128x32xf32>
    %8 = arith.maximumf %6, %7 : vector<128x32xf32>
    %9 = arith.truncf %8 : vector<128x32xf32> to vector<128x32xbf16>
    %10 = vector.extract_strided_slice %9 {offsets = [0, 0], sizes = [32, 32], strides = [1, 1]} : vector<128x32xbf16> to vector<32x32xbf16>
    %c0_7 = arith.constant 0 : index
    %c0_8 = arith.constant 0 : index
    %c0_9 = arith.constant 0 : index
    %11 = vector.load %arg4[%c0_7, %c0_8, %c0_9] : memref<4x32x64xbf16, #tpu.memory_space<vmem>>, vector<1x32x64xbf16>
    %12 = vector.shape_cast %11 : vector<1x32x64xbf16> to vector<32x64xbf16>
    %cst_10 = arith.constant dense<0.000000e+00> : vector<32x64xf32>
    %13 = tpu.matmul %10, %12, %cst_10 {dimension_numbers = #tpu.dot_dimension_numbers<[1], [0], [0], [1], [0, 0, 1, 1], [], []>} : vector<32x32xbf16>, vector<32x64xbf16>, vector<32x64xf32> -> vector<32x64xf32>
    %14 = vector.extract_strided_slice %9 {offsets = [32, 0], sizes = [32, 32], strides = [1, 1]} : vector<128x32xbf16> to vector<32x32xbf16>
    %c1 = arith.constant 1 : index
    %c0_11 = arith.constant 0 : index
    %c0_12 = arith.constant 0 : index
    %15 = vector.load %arg4[%c1, %c0_11, %c0_12] : memref<4x32x64xbf16, #tpu.memory_space<vmem>>, vector<1x32x64xbf16>
    %16 = vector.shape_cast %15 : vector<1x32x64xbf16> to vector<32x64xbf16>
    %cst_13 = arith.constant dense<0.000000e+00> : vector<32x64xf32>
    %17 = tpu.matmul %14, %16, %cst_13 {dimension_numbers = #tpu.dot_dimension_numbers<[1], [0], [0], [1], [0, 0, 1, 1], [], []>} : vector<32x32xbf16>, vector<32x64xbf16>, vector<32x64xf32> -> vector<32x64xf32>
    %18 = arith.addf %13, %17 : vector<32x64xf32>
    %19 = vector.extract_strided_slice %9 {offsets = [64, 0], sizes = [32, 32], strides = [1, 1]} : vector<128x32xbf16> to vector<32x32xbf16>
    %c2 = arith.constant 2 : index
    %c0_14 = arith.constant 0 : index
    %c0_15 = arith.constant 0 : index
    %20 = vector.load %arg4[%c2, %c0_14, %c0_15] : memref<4x32x64xbf16, #tpu.memory_space<vmem>>, vector<1x32x64xbf16>
    %21 = vector.shape_cast %20 : vector<1x32x64xbf16> to vector<32x64xbf16>
    %cst_16 = arith.constant dense<0.000000e+00> : vector<32x64xf32>
    %22 = tpu.matmul %19, %21, %cst_16 {dimension_numbers = #tpu.dot_dimension_numbers<[1], [0], [0], [1], [0, 0, 1, 1], [], []>} : vector<32x32xbf16>, vector<32x64xbf16>, vector<32x64xf32> -> vector<32x64xf32>
    %23 = arith.addf %18, %22 : vector<32x64xf32>
    %24 = vector.extract_strided_slice %9 {offsets = [96, 0], sizes = [32, 32], strides = [1, 1]} : vector<128x32xbf16> to vector<32x32xbf16>
    %c3 = arith.constant 3 : index
    %c0_17 = arith.constant 0 : index
    %c0_18 = arith.constant 0 : index
    %25 = vector.load %arg4[%c3, %c0_17, %c0_18] : memref<4x32x64xbf16, #tpu.memory_space<vmem>>, vector<1x32x64xbf16>
    %26 = vector.shape_cast %25 : vector<1x32x64xbf16> to vector<32x64xbf16>
    %cst_19 = arith.constant dense<0.000000e+00> : vector<32x64xf32>
    %27 = tpu.matmul %24, %26, %cst_19 {dimension_numbers = #tpu.dot_dimension_numbers<[1], [0], [0], [1], [0, 0, 1, 1], [], []>} : vector<32x32xbf16>, vector<32x64xbf16>, vector<32x64xf32> -> vector<32x64xf32>
    %28 = arith.addf %23, %27 : vector<32x64xf32>
    %c0_20 = arith.constant 0 : index
    %c0_21 = arith.constant 0 : index
    %29 = vector.load %arg5[%c0_20, %c0_21] : memref<1x64xf32, #tpu.memory_space<vmem>>, vector<1x64xf32>
    %30 = vector.broadcast %29 : vector<1x64xf32> to vector<32x64xf32>
    %31 = arith.addf %28, %30 : vector<32x64xf32>
    %cst_22 = arith.constant 0.000000e+00 : f32
    %32 = vector.broadcast %cst_22 : f32 to vector<32x64xf32>
    %33 = arith.maximumf %31, %32 : vector<32x64xf32>
    %34 = arith.truncf %33 : vector<32x64xf32> to vector<32x64xbf16>
    %c0_23 = arith.constant 0 : index
    %c0_24 = arith.constant 0 : index
    %35 = vector.load %arg6[%c0_23, %c0_24] : memref<64x256xbf16, #tpu.memory_space<vmem>>, vector<64x256xbf16>
    %cst_25 = arith.constant dense<0.000000e+00> : vector<32x256xf32>
    %36 = tpu.matmul %34, %35, %cst_25 {dimension_numbers = #tpu.dot_dimension_numbers<[1], [0], [0], [1], [0, 0, 1, 1], [], []>} : vector<32x64xbf16>, vector<64x256xbf16>, vector<32x256xf32> -> vector<32x256xf32>
    %c0_26 = arith.constant 0 : index
    %c0_27 = arith.constant 0 : index
    %37 = vector.load %arg15[%c0_26, %c0_27] : memref<32x256xf32, #tpu.memory_space<vmem>>, vector<32x256xf32>
    tpu.vector_store %arg15[%c0_26, %c0_27], %36 {strides = array<i32>} : memref<32x256xf32, #tpu.memory_space<vmem>>, vector<32x256xf32>,
    %c0_28 = arith.constant 0 : index
    %c0_29 = arith.constant 0 : index
    %38 = vector.load %arg15[%c0_28, %c0_29] : memref<32x256xf32, #tpu.memory_space<vmem>>, vector<2x64xf32>
    %c2_30 = arith.constant 2 : index
    %c64 = arith.constant 64 : index
    %39 = vector.load %arg15[%c2_30, %c64] : memref<32x256xf32, #tpu.memory_space<vmem>>, vector<2x64xf32>
    %40 = arith.addf %38, %39 : vector<2x64xf32>
    %c8 = arith.constant 8 : index
    %c128 = arith.constant 128 : index
    %41 = vector.load %arg15[%c8, %c128] : memref<32x256xf32, #tpu.memory_space<vmem>>, vector<2x64xf32>
    %42 = arith.addf %40, %41 : vector<2x64xf32>
    %c10 = arith.constant 10 : index
    %c192 = arith.constant 192 : index
    %43 = vector.load %arg15[%c10, %c192] : memref<32x256xf32, #tpu.memory_space<vmem>>, vector<2x64xf32>
    %44 = arith.addf %42, %43 : vector<2x64xf32>
    %c2_31 = arith.constant 2 : index
    %c0_32 = arith.constant 0 : index
    %45 = vector.load %arg15[%c2_31, %c0_32] : memref<32x256xf32, #tpu.memory_space<vmem>>, vector<2x64xf32>
    %c4 = arith.constant 4 : index
    %c64_33 = arith.constant 64 : index
    %46 = vector.load %arg15[%c4, %c64_33] : memref<32x256xf32, #tpu.memory_space<vmem>>, vector<2x64xf32>
    %47 = arith.addf %45, %46 : vector<2x64xf32>
    %c10_34 = arith.constant 10 : index
    %c128_35 = arith.constant 128 : index
    %48 = vector.load %arg15[%c10_34, %c128_35] : memref<32x256xf32, #tpu.memory_space<vmem>>, vector<2x64xf32>
    %49 = arith.addf %47, %48 : vector<2x64xf32>
    %c12 = arith.constant 12 : index
    %c192_36 = arith.constant 192 : index
    %50 = vector.load %arg15[%c12, %c192_36] : memref<32x256xf32, #tpu.memory_space<vmem>>, vector<2x64xf32>
    %51 = arith.addf %49, %50 : vector<2x64xf32>
    %52 = arith.maximumf %44, %51 : vector<2x64xf32>
    %c8_37 = arith.constant 8 : index
    %c0_38 = arith.constant 0 : index
    %53 = vector.load %arg15[%c8_37, %c0_38] : memref<32x256xf32, #tpu.memory_space<vmem>>, vector<2x64xf32>
    %c10_39 = arith.constant 10 : index
    %c64_40 = arith.constant 64 : index
    %54 = vector.load %arg15[%c10_39, %c64_40] : memref<32x256xf32, #tpu.memory_space<vmem>>, vector<2x64xf32>
    %55 = arith.addf %53, %54 : vector<2x64xf32>
    %c16 = arith.constant 16 : index
    %c128_41 = arith.constant 128 : index
    %56 = vector.load %arg15[%c16, %c128_41] : memref<32x256xf32, #tpu.memory_space<vmem>>, vector<2x64xf32>
    %57 = arith.addf %55, %56 : vector<2x64xf32>
    %c18 = arith.constant 18 : index
    %c192_42 = arith.constant 192 : index
    %58 = vector.load %arg15[%c18, %c192_42] : memref<32x256xf32, #tpu.memory_space<vmem>>, vector<2x64xf32>
    %59 = arith.addf %57, %58 : vector<2x64xf32>
    %c10_43 = arith.constant 10 : index
    %c0_44 = arith.constant 0 : index
    %60 = vector.load %arg15[%c10_43, %c0_44] : memref<32x256xf32, #tpu.memory_space<vmem>>, vector<2x64xf32>
    %c12_45 = arith.constant 12 : index
    %c64_46 = arith.constant 64 : index
    %61 = vector.load %arg15[%c12_45, %c64_46] : memref<32x256xf32, #tpu.memory_space<vmem>>, vector<2x64xf32>
    %62 = arith.addf %60, %61 : vector<2x64xf32>
    %c18_47 = arith.constant 18 : index
    %c128_48 = arith.constant 128 : index
    %63 = vector.load %arg15[%c18_47, %c128_48] : memref<32x256xf32, #tpu.memory_space<vmem>>, vector<2x64xf32>
    %64 = arith.addf %62, %63 : vector<2x64xf32>
    %c20 = arith.constant 20 : index
    %c192_49 = arith.constant 192 : index
    %65 = vector.load %arg15[%c20, %c192_49] : memref<32x256xf32, #tpu.memory_space<vmem>>, vector<2x64xf32>
    %66 = arith.addf %64, %65 : vector<2x64xf32>
    %67 = arith.maximumf %59, %66 : vector<2x64xf32>
    %68 = arith.maximumf %52, %67 : vector<2x64xf32>
    %c0_50 = arith.constant 0 : index
    %c0_51 = arith.constant 0 : index
    %69 = vector.load %arg7[%c0_50, %c0_51] : memref<1x64xf32, #tpu.memory_space<vmem>>, vector<1x64xf32>
    %70 = vector.broadcast %69 : vector<1x64xf32> to vector<2x64xf32>
    %71 = arith.addf %68, %70 : vector<2x64xf32>
    %72 = arith.truncf %71 : vector<2x64xf32> to vector<2x64xbf16>
    %c0_52 = arith.constant 0 : index
    %c0_53 = arith.constant 0 : index
    %c0_54 = arith.constant 0 : index
    %73 = vector.load %arg8[%c0_52, %c0_53, %c0_54] : memref<1x64x512xbf16, #tpu.memory_space<vmem>>, vector<1x64x512xbf16>
    %74 = vector.shape_cast %73 : vector<1x64x512xbf16> to vector<64x512xbf16>
    %cst_55 = arith.constant dense<0.000000e+00> : vector<2x512xf32>
    %75 = tpu.matmul %72, %74, %cst_55 {dimension_numbers = #tpu.dot_dimension_numbers<[1], [0], [0], [1], [0, 0, 1, 1], [], []>} : vector<2x64xbf16>, vector<64x512xbf16>, vector<2x512xf32> -> vector<2x512xf32>
    %c0_56 = arith.constant 0 : index
    %c0_57 = arith.constant 0 : index
    %76 = vector.load %arg9[%c0_56, %c0_57] : memref<1x512xf32, #tpu.memory_space<vmem>>, vector<1x512xf32>
    %77 = vector.broadcast %76 : vector<1x512xf32> to vector<2x512xf32>
    %78 = arith.addf %75, %77 : vector<2x512xf32>
    %cst_58 = arith.constant 0.000000e+00 : f32
    %79 = vector.broadcast %cst_58 : f32 to vector<2x512xf32>
    %80 = arith.maximumf %78, %79 : vector<2x512xf32>
    %81 = arith.truncf %80 : vector<2x512xf32> to vector<2x512xbf16>
    %c0_59 = arith.constant 0 : index
    %c0_60 = arith.constant 0 : index
    %82 = vector.load %arg10[%c0_59, %c0_60] : memref<512x256xbf16, #tpu.memory_space<vmem>>, vector<512x256xbf16>
    %cst_61 = arith.constant dense<0.000000e+00> : vector<2x256xf32>
    %83 = tpu.matmul %81, %82, %cst_61 {dimension_numbers = #tpu.dot_dimension_numbers<[1], [0], [0], [1], [0, 0, 1, 1], [], []>} : vector<2x512xbf16>, vector<512x256xbf16>, vector<2x256xf32> -> vector<2x256xf32>
    %c0_62 = arith.constant 0 : index
    %c0_63 = arith.constant 0 : index
    %84 = vector.load %arg11[%c0_62, %c0_63] : memref<1x256xf32, #tpu.memory_space<vmem>>, vector<1x256xf32>
    %85 = vector.broadcast %84 : vector<1x256xf32> to vector<2x256xf32>
    %86 = arith.addf %83, %85 : vector<2x256xf32>
    %cst_64 = arith.constant 0.000000e+00 : f32
    %87 = vector.broadcast %cst_64 : f32 to vector<2x256xf32>
    %88 = arith.maximumf %86, %87 : vector<2x256xf32>
    %89 = arith.truncf %88 : vector<2x256xf32> to vector<2x256xbf16>
    %c0_65 = arith.constant 0 : index
    %c0_66 = arith.constant 0 : index
    %90 = vector.load %arg12[%c0_65, %c0_66] : memref<256x128xbf16, #tpu.memory_space<vmem>>, vector<256x128xbf16>
    %cst_67 = arith.constant dense<0.000000e+00> : vector<2x128xf32>
    %91 = tpu.matmul %89, %90, %cst_67 {dimension_numbers = #tpu.dot_dimension_numbers<[1], [0], [0], [1], [0, 0, 1, 1], [], []>} : vector<2x256xbf16>, vector<256x128xbf16>, vector<2x128xf32> -> vector<2x128xf32>
    %c0_68 = arith.constant 0 : index
    %c0_69 = arith.constant 0 : index
    %92 = vector.load %arg13[%c0_68, %c0_69] : memref<1x128xf32, #tpu.memory_space<vmem>>, vector<1x128xf32>
    %93 = vector.broadcast %92 : vector<1x128xf32> to vector<2x128xf32>
    %94 = arith.addf %91, %93 : vector<2x128xf32>
    %c0_70 = arith.constant 0 : index
    %c0_71 = arith.constant 0 : index
    %95 = vector.load %arg14[%c0_70, %c0_71] : memref<2x128xf32, #tpu.memory_space<vmem>>, vector<2x128xf32>
    tpu.vector_store %arg14[%c0_70, %c0_71], %94 {strides = array<i32>} : memref<2x128xf32, #tpu.memory_space<vmem>>, vector<2x128xf32>,
    return
  }
  func.func @transform_0(%arg0: i32) -> (i32, i32, i32) {
    %c0_i32 = arith.constant 0 : i32
    %c0_i32_0 = arith.constant 0 : i32
    %c0_i32_1 = arith.constant 0 : i32
    return %arg0, %c0_i32, %c0_i32_0 : i32, i32, i32
  }
  func.func @transform_1(%arg0: i32) -> (i32, i32) {
    %c0_i32 = arith.constant 0 : i32
    %c0_i32_0 = arith.constant 0 : i32
    %c0_i32_1 = arith.constant 0 : i32
    return %c0_i32, %c0_i32_0 : i32, i32
  }
  func.func @transform_2(%arg0: i32) -> (i32, i32) {
    %c0_i32 = arith.constant 0 : i32
    %c0_i32_0 = arith.constant 0 : i32
    %c0_i32_1 = arith.constant 0 : i32
    return %c0_i32, %c0_i32_0 : i32, i32
  }
  func.func @transform_3(%arg0: i32) -> (i32, i32, i32) {
    %c0_i32 = arith.constant 0 : i32
    %c0_i32_0 = arith.constant 0 : i32
    %c0_i32_1 = arith.constant 0 : i32
    %c0_i32_2 = arith.constant 0 : i32
    return %c0_i32, %c0_i32_0, %c0_i32_1 : i32, i32, i32
  }
  func.func @transform_4(%arg0: i32) -> (i32, i32) {
    %c0_i32 = arith.constant 0 : i32
    %c0_i32_0 = arith.constant 0 : i32
    %c0_i32_1 = arith.constant 0 : i32
    return %c0_i32, %c0_i32_0 : i32, i32
  }
  func.func @transform_5(%arg0: i32) -> (i32, i32) {
    %c0_i32 = arith.constant 0 : i32
    %c0_i32_0 = arith.constant 0 : i32
    %c0_i32_1 = arith.constant 0 : i32
    return %c0_i32, %c0_i32_0 : i32, i32
  }
  func.func @transform_6(%arg0: i32) -> (i32, i32) {
    %c0_i32 = arith.constant 0 : i32
    %c0_i32_0 = arith.constant 0 : i32
    %c0_i32_1 = arith.constant 0 : i32
    return %c0_i32, %c0_i32_0 : i32, i32
  }
  func.func @transform_7(%arg0: i32) -> (i32, i32, i32) {
    %c0_i32 = arith.constant 0 : i32
    %c0_i32_0 = arith.constant 0 : i32
    %c0_i32_1 = arith.constant 0 : i32
    %c0_i32_2 = arith.constant 0 : i32
    return %c0_i32, %c0_i32_0, %c0_i32_1 : i32, i32, i32
  }
  func.func @transform_8(%arg0: i32) -> (i32, i32) {
    %c0_i32 = arith.constant 0 : i32
    %c0_i32_0 = arith.constant 0 : i32
    %c0_i32_1 = arith.constant 0 : i32
    return %c0_i32, %c0_i32_0 : i32, i32
  }
  func.func @transform_9(%arg0: i32) -> (i32, i32) {
    %c0_i32 = arith.constant 0 : i32
    %c0_i32_0 = arith.constant 0 : i32
    %c0_i32_1 = arith.constant 0 : i32
    return %c0_i32, %c0_i32_0 : i32, i32
  }
  func.func @transform_10(%arg0: i32) -> (i32, i32) {
    %c0_i32 = arith.constant 0 : i32
    %c0_i32_0 = arith.constant 0 : i32
    %c0_i32_1 = arith.constant 0 : i32
    return %c0_i32, %c0_i32_0 : i32, i32
  }
  func.func @transform_11(%arg0: i32) -> (i32, i32) {
    %c0_i32 = arith.constant 0 : i32
    %c0_i32_0 = arith.constant 0 : i32
    %c0_i32_1 = arith.constant 0 : i32
    return %c0_i32, %c0_i32_0 : i32, i32
  }
  func.func @transform_12(%arg0: i32) -> (i32, i32) {
    %c0_i32 = arith.constant 0 : i32
    %c0_i32_0 = arith.constant 0 : i32
    %c0_i32_1 = arith.constant 0 : i32
    return %c0_i32, %c0_i32_0 : i32, i32
  }
  func.func @transform_13(%arg0: i32) -> (i32, i32) {
    %c0_i32 = arith.constant 0 : i32
    %c0_i32_0 = arith.constant 0 : i32
    return %arg0, %c0_i32 : i32, i32
  }
}

</mosaic_0001>

<bundles_post_ra>
// kernel: ddqn_forward_pallas.1
= control target key start
LH: loop header
LB: loop body
LE: loop exit
PB: predicated region body
PF: predicated region fallthrough
CT: control target
= control target key end

     0   :  { %vm140_vm0 = vcmask 523264   ;;  %vm307_vm1 = vcmask 261120   ;;  %s2124_s28 = smov 64   ;;  %s2678_s1 = inlined_call_operand.vmem [shape: bf16[64,32], index: 1, kind: input, shape index: {}]   ;;  %s2679_s0 = inlined_call_operand.vmem [shape: bf16[1,128,64], index: 0, kind: input, shape index: {}]   ;;  %s2680_s3 = inlined_call_operand.vmem [shape: bf16[4,32,64], index: 3, kind: input, shape index: {}]   ;;  %s2681_s2 = inlined_call_operand.vmem [shape: f32[1,32], index: 2, kind: input, shape index: {}]   ;;  %s2682_s5 = inlined_call_operand.vmem [shape: bf16[64,256], index: 5, kind: input, shape index: {}]   ;;  %s2683_s4 = inlined_call_operand.vmem [shape: f32[1,64], index: 4, kind: input, shape index: {}]   ;;  %s2684_s7 = inlined_call_operand.vmem [shape: bf16[1,64,512], index: 7, kind: input, shape index: {}]   ;;  %s2685_s9 = inlined_call_operand.vmem [shape: bf16[512,256], index: 9, kind: input, shape index: {}]   ;;  %s2686_s6 = inlined_call_operand.vmem [shape: f32[1,64], index: 6, kind: input, shape index: {}]   ;;  %s2687_s11 = inlined_call_operand.vmem [shape: bf16[256,128], index: 11, kind: input, shape index: {}]   ;;  %s2688_s8 = inlined_call_operand.vmem [shape: f32[1,512], index: 8, kind: input, shape index: {}]   ;;  %s2689_s10 = inlined_call_operand.vmem [shape: f32[1,256], index: 10, kind: input, shape index: {}]   ;;  %s2690_s12 = inlined_call_operand.vmem [shape: f32[1,128], index: 12, kind: input, shape index: {}]   ;;  %s2691_s13 = inlined_call_operand.vmem [shape: f32[2,128], index: 13, kind: output, shape index: {}]  }
   0x1   :  { %v1955_v0 = vld [vmem:[%s2678_s1] sm:$0xff]   ;;  %v1956_v1 = vld [vmem:[%s2678_s1 + $0x8] sm:$0xff]   ;;  %v1957_v2 = vld [vmem:[%s2678_s1 + $0x10] sm:$0xff]  }
   0x2   :  { %1879 = vmatprep.subr.bf16.mxu0 %v1955_v0  ;;  %v1959_v3 = vld [vmem:[%s2679_s0] sm:$0xff]   ;;  %v1958_v4 = vld [vmem:[%s2678_s1 + $0x18] sm:$0xff]   ;;  %v1960_v5 = vld [vmem:[%s2679_s0 + $0x8] sm:$0xff]  }
   0x3   :  { %1880 = vmatpush3.bf16.msra.mxu0 %v1955_v0  ;;  %1887 = vmatprep.mubr.msk.bf16.mxu0 %vm140_vm0, %v1959_v3  ;;  %v1967_v6 = vld [vmem:[%s2680_s3 + $0x10] sm:$0xff]   ;;  %v1962_v8 = vld [vmem:[%s2679_s0 + $0x18] sm:$0xff]   ;;  %v1963_v9 = vld [vmem:[%s2679_s0 + $0x20] sm:$0xff]  }
   0x4   :  { %1881 = vmatprep.subr.bf16.mxu0 %v1956_v1  ;;  %v1961_v7 = vld [vmem:[%s2679_s0 + $0x10] sm:$0xff]   ;;  %v1964_v10 = vld [vmem:[%s2679_s0 + $0x28] sm:$0xff]   ;;  %v1966_v12 = vld [vmem:[%s2679_s0 + $0x38] sm:$0xff]  }
   0x5   :  { %v1965_v11 = vld [vmem:[%s2679_s0 + $0x30] sm:$0xff]   ;;  %v1968_v13 = vld [vmem:[%s2680_s3 + $0x18] sm:$0xff]   ;;  %v1969_v14 = vld [vmem:[%s2680_s3 + $0x20] sm:$0xff]  }
   0x6   :  { %1919 = vmatprep.subr.bf16.mxu1 %v1969_v14  ;;  %v1970_v15 = vld [vmem:[%s2680_s3 + $0x28] sm:$0xff]   ;;  %v1971_v16 = vld [vmem:[%s2680_s3] sm:$0xff]   ;;  %v2257_v17 = vld [vmem:[%s2680_s3 + $0x30] sm:$0xff]  }
   0x7   :  { %1882 = vmatpush3.bf16.msra.mxu0 %v1956_v1  ;;  %1920 = vmatpush3.bf16.msra.mxu1 %v1969_v14  ;;  %v2263_v18 = vld [vmem:[%s2681_s2] ss:$0 sm:$0xff]  ;;  %v1973_v50 = vld [vmem:[%s2680_s3 + $0x8] sm:$0xff]   ;;  %v1974_v1 = vld [vmem:[%s2680_s3 + $0x38] sm:$0xff]  }
   0x8   :  { %1883 = vmatprep.subr.bf16.mxu0 %v1957_v2  ;;  %1921 = vmatprep.subr.bf16.mxu1 %v1970_v15  ;;  %v1975_v14 = vld [vmem:[%s2682_s5] ss:$8 sps:$4 sm:$0xff]  }
   0xb   :  { %1884 = vmatpush3.bf16.msra.mxu0 %v1957_v2  ;;  %1922 = vmatpush3.bf16.msra.mxu1 %v1970_v15  ;;  %v1980_v15 = vld [vmem:[%s2682_s5 + $0x14] ss:$8 sps:$4 sm:$0xff]  }
   0xc   :  { %1885 = vmatprep.subr.bf16.mxu0 %v1958_v4  ;;  %1927 = vmatprep.subr.bf16.mxu1 %v2257_v17 }
   0xf   :  { %1886 = vmatpush3.bf16.msra.mxu0 %v1958_v4 }
  0x10   :  { %1903 = vmatprep.subr.bf16.mxu0 %v1967_v6 }
  0x12   :  { %1888 = vmatmul.mubr.msk.bf16.vlgmr.msra.gmra.mrb[0].mxu0 %vm140_vm0, %v1960_v5 }
  0x13   :  { %1891 = vmatprep.mubr.msk.bf16.mxu0 %vm140_vm0, %v1961_v7  ;;  %1904 = vmatpush3.bf16.msra.mxu0 %v1967_v6 }
  0x14   :  { %1905 = vmatprep.subr.bf16.mxu0 %v1968_v13 }
  0x17   :  { %1906 = vmatpush3.bf16.msra.mxu0 %v1968_v13  ;;  %v1977_v13 = vld [vmem:[%s2682_s5 + $0x4] ss:$8 sps:$4 sm:$0xff]  }
  0x18   :  { %1911 = vmatprep.subr.bf16.mxu0 %v1971_v16 }
  0x1a   :  { %1892 = vmatmul.mubr.msk.bf16.gmra.mrb[4].mxu0 %vm140_vm0, %v1962_v8 }
  0x1b   :  { %1895 = vmatprep.mubr.msk.bf16.mxu0 %vm140_vm0, %v1963_v9 }
  0x22   :  { %1896 = vmatmul.mubr.msk.bf16.gmra.mrb[8].mxu0 %vm140_vm0, %v1964_v10 }
  0x23   :  { %1899 = vmatprep.mubr.msk.bf16.mxu0 %vm140_vm0, %v1965_v11 }
  0x2a   :  { %1900 = vmatmul.mubr.msk.bf16.gmra.mrb[12].mxu0 %vm140_vm0, %v1966_v12 }
  0xe5   :  { %v1889_v19 = vpop.f32.mrb[0].mxu0 }
  0xe6   :  { %v208_v20 = vadd.f32 %v1889_v19, %v2263_v18  ;;  %v199_v21 = vpop.f32.mrb[1].mxu0  ;;  %v1986_v19 = vld [vmem:[%s2682_s5 + $0x34] ss:$8 sps:$4 sm:$0xff]  }
  0xe7   :  { %v200_v22 = vadd.f32 %v2263_v18, %v199_v21  ;;  %v1890_v23 = vpop.f32.mrb[2].mxu0  ;;  %v2123_v21 = vmov 0  }
  0xe8   :  { %v211_v24 = vadd.f32 %v1890_v23, %v2263_v18  ;;  %v202_v25 = vpop.f32.mrb[3].mxu0  ;;  %v264_v27 = vmax.f32 %v208_v20, 0.0  ;;  %v1984_v20 = vld [vmem:[%s2682_s5 + $0x30] ss:$8 sps:$4 sm:$0xff]  }
  0xe9   :  { %v203_v26 = vadd.f32 %v2263_v18, %v202_v25  ;;  %v262_v29 = vmax.f32 %v200_v22, 0.0 }
  0xea   :  { %v265_v28 = vmax.f32 %v211_v24, 0.0 }
  0xeb   :  { %v263_v30 = vmax.f32 %v203_v26, 0.0 }
  0xec   :  { %v279_v31 = vpack.c.bf16 %v265_v28, %v264_v27  ;;  %v1718_v27 = vld [vmem:[%s2683_s4] ss:$0 sm:$0xff] }
  0xed   :  { %v278_v32 = vpack.c.bf16 %v263_v30, %v262_v29  ;;  %v1893_v33 = vpop.f32.mrb[4].mxu0 }
  0xee   :  { %v224_v34 = vadd.f32 %v1893_v33, %v2263_v18  ;;  %v215_v35 = vpop.f32.mrb[5].mxu0 }
  0xef   :  { %v216_v36 = vadd.f32 %v2263_v18, %v215_v35  ;;  %v1894_v37 = vpop.f32.mrb[6].mxu0 }
  0xf0   :  { %v227_v38 = vadd.f32 %v1894_v37, %v2263_v18  ;;  %v218_v39 = vpop.f32.mrb[7].mxu0  ;;  %v268_v41 = vmax.f32 %v224_v34, 0.0 }
  0xf1   :  { %v219_v40 = vadd.f32 %v2263_v18, %v218_v39  ;;  %v266_v43 = vmax.f32 %v216_v36, 0.0 }
  0xf2   :  { %v269_v42 = vmax.f32 %v227_v38, 0.0 }
  0xf3   :  { %v267_v44 = vmax.f32 %v219_v40, 0.0 }
  0xf4   :  { %v281_v45 = vpack.c.bf16 %v269_v42, %v268_v41 }
  0xf5   :  { %v280_v46 = vpack.c.bf16 %v267_v44, %v266_v43  ;;  %v1897_v47 = vpop.f32.mrb[8].mxu0 }
  0xf6   :  { %v240_v48 = vadd.f32 %v1897_v47, %v2263_v18  ;;  %v231_v49 = vpop.f32.mrb[9].mxu0 }
  0xf7   :  { %v232_v51 = vadd.f32 %v2263_v18, %v231_v49  ;;  %v1898_v52 = vpop.f32.mrb[10].mxu0  ;;  %1907 = vmatprep.mubr.msk.bf16.mxu0 %vm307_vm1, %v280_v46  ;;  %v1987_v49 = vld [vmem:[%s2684_s7] ss:$16 sps:$4 sm:$0xff]  }
  0xf8   :  { %v243_v53 = vadd.f32 %v1898_v52, %v2263_v18  ;;  %v234_v54 = vpop.f32.mrb[11].mxu0  ;;  %1908 = vmatmul.mubr.msk.bf16.vlgmr.msra.gmra.mrb[16].mxu0 %vm307_vm1, %v281_v45  ;;  %v272_v56 = vmax.f32 %v240_v48, 0.0 }
  0xf9   :  { %v235_v55 = vadd.f32 %v2263_v18, %v234_v54  ;;  %1915 = vmatprep.mubr.msk.bf16.mxu0 %vm307_vm1, %v278_v32  ;;  %1912 = vmatpush3.bf16.msra.mxu0 %v1971_v16  ;;  %v270_v58 = vmax.f32 %v232_v51, 0.0  ;;  %v1978_v16 = vld [vmem:[%s2682_s5 + $0x10] ss:$8 sps:$4 sm:$0xff]  }
  0xfa   :  { %v273_v57 = vmax.f32 %v243_v53, 0.0  ;;  %1913 = vmatprep.subr.bf16.mxu0 %v1973_v50 }
  0xfb   :  { %v271_v59 = vmax.f32 %v235_v55, 0.0 }
  0xfc   :  { %v283_v60 = vpack.c.bf16 %v273_v57, %v272_v56 }
  0xfd   :  { %v1901_v61 = vpop.f32.mrb[12].mxu0  ;;  %v282_v62 = vpack.c.bf16 %v271_v59, %v270_v58  ;;  %1914 = vmatpush3.bf16.msra.mxu0 %v1973_v50  ;;  %v1989_v50 = vld [vmem:[%s2684_s7 + $0x4] ss:$16 sps:$4 sm:$0xff]  }
  0xfe   :  { %v256_v63 = vadd.f32 %v1901_v61, %v2263_v18  ;;  %v247_v0 = vpop.f32.mrb[13].mxu0  ;;  %653 = vmatprep.subr.bf16.mxu0 %v1977_v13  ;;  %v2001_v13 = vld [vmem:[%s2684_s7 + $0xc] ss:$16 sps:$4 sm:$0xff]  }
  0xff   :  { %v248_v2 = vadd.f32 %v2263_v18, %v247_v0  ;;  %1923 = vmatprep.mubr.msk.bf16.mxu1 %vm307_vm1, %v282_v62  ;;  %v1902_v3 = vpop.f32.mrb[14].mxu0  ;;  %v1992_v0 = vld [vmem:[%s2684_s7 + $0x24] ss:$16 sps:$4 sm:$0xff]  }
 0x100   :  { %v276_v4 = vmax.f32 %v256_v63, 0.0  ;;  %v259_v5 = vadd.f32 %v1902_v3, %v2263_v18  ;;  %1924 = vmatmul.mubr.msk.bf16.vlgmr.msra.gmra.mrb[0].mxu1 %vm307_vm1, %v283_v60  ;;  %v250_v6 = vpop.f32.mrb[15].mxu0  ;;  %v1990_v63 = vld [vmem:[%s2684_s7 + $0x20] ss:$16 sps:$4 sm:$0xff]  }
 0x101   :  { %v274_v7 = vmax.f32 %v248_v2, 0.0  ;;  %1928 = vmatpush3.bf16.msra.mxu1 %v2257_v17  ;;  %v251_v8 = vadd.f32 %v2263_v18, %v250_v6  ;;  %v1983_v17 = vld [vmem:[%s2682_s5 + $0x24] ss:$8 sps:$4 sm:$0xff]   ;;  %v1981_v18 = vld [vmem:[%s2682_s5 + $0x20] ss:$8 sps:$4 sm:$0xff]  }
 0x102   :  { %v277_v9 = vmax.f32 %v259_v5, 0.0  ;;  %1929 = vmatprep.subr.bf16.mxu1 %v1974_v1  ;;  %v1995_v2 = vld [vmem:[%s2684_s7 + $0x44] ss:$16 sps:$4 sm:$0xff]   ;;  %v1993_v5 = vld [vmem:[%s2684_s7 + $0x40] ss:$16 sps:$4 sm:$0xff]  }
 0x103   :  { %v275_v10 = vmax.f32 %v251_v8, 0.0  ;;  %v1998_v8 = vld [vmem:[%s2684_s7 + $0x64] ss:$16 sps:$4 sm:$0xff]  }
 0x104   :  { %v285_v11 = vpack.c.bf16 %v277_v9, %v276_v4  ;;  %1916 = vmatmul.mubr.msk.bf16.vlgmr.msra.gmra.mrb[16].mxu0 %vm307_vm1, %v279_v31 }
 0x105   :  { %v284_v12 = vpack.c.bf16 %v275_v10, %v274_v7  ;;  %1930 = vmatpush3.bf16.msra.mxu1 %v1974_v1  ;;  %654 = vmatpush1.bf16.msra.mxu0 %v1975_v14  ;;  %v2011_v14 = vld [vmem:[%s2685_s9] ss:$8 sps:$4 sm:$0xff]  }
 0x106   :  { %655 = vmatprep.subr.bf16.mxu0 %v1980_v15  ;;  %685 = vmatprep.mubr.bf16.mxu0 %v2123_v21  ;;  %v2013_v15 = vld [vmem:[%s2685_s9 + $0x4] ss:$8 sps:$4 sm:$0xff]  }
 0x107   :  { %1931 = vmatprep.mubr.msk.bf16.mxu1 %vm307_vm1, %v284_v12  ;;  %1403 = vmatprep.subr.bf16.mxu1 %v2013_v15  ;;  %v2005_v15 = vld [vmem:[%s2684_s7 + $0x48] ss:$16 sps:$4 sm:$0xff]  }
 0x109   :  { %656 = vmatpush1.bf16.msra.mxu0 %v1978_v16  ;;  %v2016_v16 = vld [vmem:[%s2685_s9 + $0x14] ss:$8 sps:$4 sm:$0xff]  }
 0x10a   :  { %657 = vmatprep.subr.bf16.mxu0 %v1983_v17  ;;  %v2014_v17 = vld [vmem:[%s2685_s9 + $0x10] ss:$8 sps:$4 sm:$0xff]  }
 0x10c   :  { %1932 = vmatmul.mubr.msk.bf16.vlgmr.msra.gmra.mrb[0].mxu1 %vm307_vm1, %v285_v11  ;;  %v1996_v11 = vld [vmem:[%s2684_s7 + $0x60] ss:$16 sps:$4 sm:$0xff]  }
 0x10d   :  { %658 = vmatpush1.bf16.msra.mxu0 %v1981_v18  ;;  %1404 = vmatpush1.bf16.msra.mxu1 %v2011_v14  ;;  %v2019_v18 = vld [vmem:[%s2685_s9 + $0x24] ss:$8 sps:$4 sm:$0xff]  }
 0x10e   :  { %659 = vmatprep.subr.bf16.mxu0 %v1986_v19  ;;  %1405 = vmatprep.subr.bf16.mxu1 %v2016_v16  ;;  %v2017_v19 = vld [vmem:[%s2685_s9 + $0x20] ss:$8 sps:$4 sm:$0xff]   ;;  %v2007_v14 = vld [vmem:[%s2684_s7 + $0x4c] ss:$16 sps:$4 sm:$0xff]  }
 0x10f   :  { %v2010_v16 = vld [vmem:[%s2684_s7 + $0x6c] ss:$16 sps:$4 sm:$0xff]  }
 0x111   :  { %660 = vmatpush1.bf16.msra.mxu0 %v1984_v20  ;;  %1406 = vmatpush1.bf16.msra.mxu1 %v2014_v17  ;;  %v2022_v20 = vld [vmem:[%s2685_s9 + $0x34] ss:$8 sps:$4 sm:$0xff]   ;;  %v2055_v17 = vld [vmem:[%s2685_s9 + $0xe4] ss:$8 sps:$4 sm:$0xff]  }
 0x112   :  { %917 = vmatprep.subr.bf16.mxu0 %v1989_v50  ;;  %1407 = vmatprep.subr.bf16.mxu1 %v2019_v18  ;;  %v2053_v18 = vld [vmem:[%s2685_s9 + $0xe0] ss:$8 sps:$4 sm:$0xff]  }
 0x115   :  { %1408 = vmatpush1.bf16.msra.mxu1 %v2017_v19  ;;  %v2058_v19 = vld [vmem:[%s2685_s9 + $0xf4] ss:$8 sps:$4 sm:$0xff]  }
 0x116   :  { %1409 = vmatprep.subr.bf16.mxu1 %v2022_v20  ;;  %v2056_v20 = vld [vmem:[%s2685_s9 + $0xf0] ss:$8 sps:$4 sm:$0xff]  }
 0x1d7   :  { %v1917_v22 = vpop.f32.mrb[16].mxu0 }
 0x1d8   :  { %v415_v23 = vpop.f32.mrb[17].mxu0 }
 0x1d9   :  { %v1918_v24 = vpop.f32.mrb[18].mxu0 }
 0x1da   :  { %v418_v25 = vpop.f32.mrb[19].mxu0 }
 0x1df   :  { %v1933_v26 = vpop.f32.mrb[0].mxu1 }
 0x1e0   :  { %v1935_v28 = vadd.f32 %v1933_v26, %v1917_v22  ;;  %v563_v29 = vpop.f32.mrb[1].mxu1  ;;  %v2020_v22 = vld [vmem:[%s2685_s9 + $0x30] ss:$8 sps:$4 sm:$0xff]  }
 0x1e1   :  { %v1936_v30 = vadd.f32 %v563_v29, %v415_v23  ;;  %v1934_v31 = vpop.f32.mrb[2].mxu1  ;;  %v2025_v23 = vld [vmem:[%s2685_s9 + $0x44] ss:$8 sps:$4 sm:$0xff]   ;;  %1410 = vmatpush1.bf16.msra.mxu1 %v2020_v22  ;;  %v2026_v26 = vld [vmem:[%s2685_s9 + $0x50] ss:$8 sps:$4 sm:$0xff]  }
 0x1e2   :  { %v591_v32 = vadd.f32 %v1935_v28, %v1718_v27  ;;  %v1937_v33 = vadd.f32 %v1934_v31, %v1918_v24  ;;  %v566_v34 = vpop.f32.mrb[3].mxu1  ;;  %v2023_v24 = vld [vmem:[%s2685_s9 + $0x40] ss:$8 sps:$4 sm:$0xff]   ;;  %1411 = vmatprep.subr.bf16.mxu1 %v2025_v23  ;;  %v2034_v29 = vld [vmem:[%s2685_s9 + $0x74] ss:$8 sps:$4 sm:$0xff]  }
 0x1e3   :  { %v589_v35 = vadd.f32 %v1936_v30, %v1718_v27  ;;  %v1938_v36 = vadd.f32 %v566_v34, %v418_v25  ;;  %v2028_v25 = vld [vmem:[%s2685_s9 + $0x54] ss:$8 sps:$4 sm:$0xff]   ;;  %v2029_v28 = vld [vmem:[%s2685_s9 + $0x60] ss:$8 sps:$4 sm:$0xff]   ;;  %v2032_v30 = vld [vmem:[%s2685_s9 + $0x70] ss:$8 sps:$4 sm:$0xff]  }
 0x1e4   :  { %v592_v37 = vadd.f32 %v1937_v33, %v1718_v27  ;;  %v595_v39 = vmax.f32 %v591_v32, 0.0  ;;  %v2037_v31 = vld [vmem:[%s2685_s9 + $0x84] ss:$8 sps:$4 sm:$0xff]   ;;  %v2035_v32 = vld [vmem:[%s2685_s9 + $0x80] ss:$8 sps:$4 sm:$0xff]  }
 0x1e5   :  { %v590_v38 = vadd.f32 %v1938_v36, %v1718_v27  ;;  %v593_v41 = vmax.f32 %v589_v35, 0.0  ;;  %v2031_v27 = vld [vmem:[%s2685_s9 + $0x64] ss:$8 sps:$4 sm:$0xff]   ;;  %1412 = vmatpush1.bf16.msra.mxu1 %v2023_v24  ;;  %v2040_v33 = vld [vmem:[%s2685_s9 + $0x94] ss:$8 sps:$4 sm:$0xff]  }
 0x1e6   :  { %v596_v40 = vmax.f32 %v592_v37, 0.0  ;;  %1413 = vmatprep.subr.bf16.mxu1 %v2028_v25  ;;  %v2038_v34 = vld [vmem:[%s2685_s9 + $0x90] ss:$8 sps:$4 sm:$0xff]   ;;  %v2043_v35 = vld [vmem:[%s2685_s9 + $0xa4] ss:$8 sps:$4 sm:$0xff]  }
 0x1e7   :  { %v594_v42 = vmax.f32 %v590_v38, 0.0  ;;  %v2041_v36 = vld [vmem:[%s2685_s9 + $0xa0] ss:$8 sps:$4 sm:$0xff]   ;;  %v2046_v37 = vld [vmem:[%s2685_s9 + $0xb4] ss:$8 sps:$4 sm:$0xff]  }
 0x1e8   :  { %v598_v43 = vpack.c.bf16 %v596_v40, %v595_v39  ;;  %v2044_v38 = vld [vmem:[%s2685_s9 + $0xb0] ss:$8 sps:$4 sm:$0xff]   ;;  %v2049_v39 = vld [vmem:[%s2685_s9 + $0xc4] ss:$8 sps:$4 sm:$0xff]   ;;  %v2047_v40 = vld [vmem:[%s2685_s9 + $0xc0] ss:$8 sps:$4 sm:$0xff]  }
 0x1e9   :  { %v597_v44 = vpack.c.bf16 %v594_v42, %v593_v41  ;;  %1414 = vmatpush1.bf16.msra.mxu1 %v2026_v26  ;;  %v2052_v41 = vld [vmem:[%s2685_s9 + $0xd4] ss:$8 sps:$4 sm:$0xff]   ;;  %v2050_v42 = vld [vmem:[%s2685_s9 + $0xd0] ss:$8 sps:$4 sm:$0xff]   ;;  %v2061_v22 = vld [vmem:[%s2685_s9 + $0x104] ss:$8 sps:$4 sm:$0xff]  }
 0x1ea   :  { %1415 = vmatprep.subr.bf16.mxu1 %v2031_v27  ;;  %v2107_v23 = vld [vmem:[%s2687_s11 + $0x40] sm:$0xff]   ;;  %v2109_v25 = vld [vmem:[%s2687_s11 + $0x48] sm:$0xff]   ;;  %v2111_v27 = vld [vmem:[%s2687_s11 + $0x50] sm:$0xff]  }
 0x1eb   :  { %1727 = vmatmul.mubr.msk.bf16.vlgmr.msra.gmra.mrb[20].mxu0 %vm140_vm0, %v597_v44  ;;  %v2108_v24 = vld [vmem:[%s2687_s11] sm:$0xff]   ;;  %v2110_v26 = vld [vmem:[%s2687_s11 + $0x8] sm:$0xff]  }
 0x1ec   :  { %695 = vmatprep.mubr.bf16.mxu0 %v2123_v21  ;;  %918 = vmatpush1.bf16.msra.mxu0 %v1987_v49 }
 0x1ed   :  { %919 = vmatprep.subr.bf16.mxu0 %v1992_v0  ;;  %1416 = vmatpush1.bf16.msra.mxu1 %v2029_v28  ;;  %v2112_v28 = vld [vmem:[%s2687_s11 + $0x10] sm:$0xff]  }
 0x1ee   :  { %1417 = vmatprep.subr.bf16.mxu1 %v2034_v29  ;;  %v2113_v29 = vld [vmem:[%s2687_s11 + $0x58] sm:$0xff]  }
 0x1f0   :  { %920 = vmatpush1.bf16.msra.mxu0 %v1990_v63 }
 0x1f1   :  { %921 = vmatprep.subr.bf16.mxu0 %v1995_v2  ;;  %1418 = vmatpush1.bf16.msra.mxu1 %v2032_v30  ;;  %v2114_v30 = vld [vmem:[%s2687_s11 + $0x18] sm:$0xff]  }
 0x1f2   :  { %1419 = vmatprep.subr.bf16.mxu1 %v2037_v31  ;;  %v2115_v31 = vld [vmem:[%s2687_s11 + $0x60] sm:$0xff]  }
 0x1f3   :  { %1728 = vmatmul.mubr.msk.bf16.gmra.mrb[24].mxu0 %vm140_vm0, %v598_v43 }
 0x1f4   :  { %949 = vmatprep.mubr.bf16.mxu0 %v2123_v21  ;;  %922 = vmatpush1.bf16.msra.mxu0 %v1993_v5 }
 0x1f5   :  { %923 = vmatprep.subr.bf16.mxu0 %v1998_v8  ;;  %1420 = vmatpush1.bf16.msra.mxu1 %v2035_v32  ;;  %v2116_v32 = vld [vmem:[%s2687_s11 + $0x20] sm:$0xff]  }
 0x1f6   :  { %1421 = vmatprep.subr.bf16.mxu1 %v2040_v33  ;;  %v2117_v33 = vld [vmem:[%s2687_s11 + $0x68] sm:$0xff]  }
 0x1f8   :  { %924 = vmatpush1.bf16.msra.mxu0 %v1996_v11 }
 0x1f9   :  { %958 = vmatprep.subr.bf16.mxu0 %v2001_v13  ;;  %1422 = vmatpush1.bf16.msra.mxu1 %v2038_v34  ;;  %v2002_v13 = vld [vmem:[%s2684_s7 + $0x28] ss:$16 sps:$4 sm:$0xff]  }
 0x1fa   :  { %1423 = vmatprep.subr.bf16.mxu1 %v2043_v35  ;;  %v2118_v34 = vld [vmem:[%s2687_s11 + $0x28] sm:$0xff]   ;;  %v814_v35 = vlaneseq }
 0x1fd   :  { %1424 = vmatpush1.bf16.msra.mxu1 %v2041_v36  ;;  %v2541_v36 = vshrl.u32 %v814_v35, 7  ;;  %v2121_v35 = vld [vmem:[%s2687_s11 + $0x78] sm:$0xff]  }
 0x1fe   :  { %1425 = vmatprep.subr.bf16.mxu1 %v2046_v37 }
 0x1ff   :  { %v816_v37 = vsub.s32 0, %v2541_v36 }
 0x201   :  { %1426 = vmatpush1.bf16.msra.mxu1 %v2044_v38  ;;  %v2547_v38 = vld [vmem:[%s2688_s8] sm:$0xf] }
 0x202   :  { %1427 = vmatprep.subr.bf16.mxu1 %v2049_v39  ;;  %v820_v39 = vsub.s32 1, %v2541_v36 }
 0x205   :  { %1428 = vmatpush1.bf16.msra.mxu1 %v2047_v40  ;;  %v817_v40 = vrot.slane %v2547_v38, %v816_v37 }
 0x206   :  { %1429 = vmatprep.subr.bf16.mxu1 %v2052_v41  ;;  %v821_v41 = vrot.slane %v2547_v38, %v820_v39 }
 0x209   :  { %1430 = vmatpush1.bf16.msra.mxu1 %v2050_v42 }
 0x20a   :  { %1431 = vmatprep.subr.bf16.mxu1 %v2055_v17  ;;  %v2094_v17 = vld [vmem:[%s2685_s9 + $0x1b4] ss:$8 sps:$4 sm:$0xff]  }
 0x20d   :  { %1432 = vmatpush1.bf16.msra.mxu1 %v2053_v18  ;;  %v2092_v18 = vld [vmem:[%s2685_s9 + $0x1b0] ss:$8 sps:$4 sm:$0xff]  }
 0x20e   :  { %1433 = vmatprep.subr.bf16.mxu1 %v2058_v19  ;;  %v2097_v19 = vld [vmem:[%s2685_s9 + $0x1c4] ss:$8 sps:$4 sm:$0xff]  }
 0x211   :  { %1434 = vmatpush1.bf16.msra.mxu1 %v2056_v20  ;;  %v2095_v20 = vld [vmem:[%s2685_s9 + $0x1c0] ss:$8 sps:$4 sm:$0xff]  }
 0x212   :  { %1444 = vmatprep.subr.bf16.mxu1 %v2061_v22  ;;  %v824_v22 = vsub.s32 2, %v2541_v36 }
 0x2be   :  { %v687_v45 = vpop.f32.mrb[20].mxu0 }
 0x2bf   :  { %706 = vst [vmem:[#allocation2] sm:$0xff] %v687_v45  ;;  %v689_v46 = vpop.f32.mrb[21].mxu0 }
 0x2c0   :  { %v691_v47 = vpop.f32.mrb[22].mxu0 }
 0x2c1   :  { %708 = vst [vmem:[#allocation2 + $0x10] sm:$0xff] %v691_v47  ;;  %v693_v48 = vpop.f32.mrb[23].mxu0 }
 0x2c2   :  { %709 = vst [vmem:[#allocation2 + $0x18] sm:$0xff] %v693_v48 }
 0x2c6   :  { %v697_v51 = vpop.f32.mrb[24].mxu0  ;;  %v731_v52 = vld [vmem:[#allocation2] sm:$0x30]  ;;  %v2334_v53 = vld [vmem:[#allocation2] sm:$0xc] }
 0x2c7   :  { %v699_v54 = vpop.f32.mrb[25].mxu0  ;;  %v733_v55 = vrot.slane %v731_v52, 2  ;;  %v717_v56 = vrot.slane %v2334_v53, 2  ;;  %v714_v49 = vld [vmem:[#allocation2] sm:$0x3] }
 0x2c8   :  { %711 = vst [vmem:[#allocation2 + $0x28] sm:$0xff] %v699_v54  ;;  %v701_v57 = vpop.f32.mrb[26].mxu0  ;;  %v767_v58 = vld [vmem:[#allocation2 + $0x10] sm:$0x30]  ;;  %v2337_v59 = vld [vmem:[#allocation2 + $0x10] sm:$0xc] }
 0x2c9   :  { %734 = vrot.lane.b32.xlu0 %v733_v55, %s2124_s28  ;;  %718 = vrot.lane.b32.xlu1 %v717_v56, %s2124_s28  ;;  %v703_v60 = vpop.f32.mrb[27].mxu0  ;;  %v769_v61 = vrot.slane %v767_v58, 2  ;;  %v753_v62 = vrot.slane %v2337_v59, 2  ;;  %v739_v1 = vld [vmem:[#allocation2 + $0x18] sm:$0x30] }
 0x2ca   :  { %v741_v3 = vrot.slane %v739_v1, 2  ;;  %v2356_v7 = vld [vmem:[#allocation2 + $0x18] sm:$0xc]  ;;  %v750_v51 = vld [vmem:[#allocation2 + $0x10] sm:$0x3] }
 0x2cb   :  { %v726_v10 = vrot.slane %v2356_v7, 2 }
 0x2cd   :  { %770 = vrot.lane.b32.xlu0 %v769_v61, %s2124_s28  ;;  %754 = vrot.lane.b32.xlu1 %v753_v62, %s2124_s28  ;;  %v722_v61 = vld [vmem:[#allocation2 + $0x18] sm:$0x3] }
 0x2cf   :  { %v775_v4 = vld [vmem:[#allocation2 + $0x28] sm:$0x30]  ;;  %v2362_v9 = vld [vmem:[#allocation2 + $0x28] sm:$0xc]  ;;  %v758_v63 = vld [vmem:[#allocation2 + $0x28] sm:$0x3] }
 0x2d0   :  { %v777_v6 = vrot.slane %v775_v4, 2  ;;  %v762_v12 = vrot.slane %v2362_v9, 2 }
 0x2d1   :  { %742 = vrot.lane.b32.xlu0 %v741_v3, %s2124_s28 }
 0x2d2   :  { %778 = vrot.lane.b32.xlu1 %v777_v6, %s2124_s28 }
 0x2d5   :  { %727 = vrot.lane.b32.xlu0 %v726_v10, %s2124_s28  ;;  %v1999_v10 = vld [vmem:[%s2684_s7 + $0x8] ss:$16 sps:$4 sm:$0xff]  }
 0x2d6   :  { %763 = vrot.lane.b32.xlu1 %v762_v12, %s2124_s28  ;;  %v2004_v12 = vld [vmem:[%s2684_s7 + $0x2c] ss:$16 sps:$4 sm:$0xff]  }
 0x33b   :  { %v735_v43 = vpop.permute.xlu0 %734  ;;  %v719_v44 = vpop.permute.xlu1 %718 }
 0x33c   :  { %v737_v45 = vadd.f32 %v735_v43, %v2334_v53  ;;  %v721_v50 = vadd.f32 %v719_v44, %v714_v49 }
 0x33e   :  { %v738_v52 = vadd.f32 %v737_v45, %v2356_v7  ;;  %v723_v62 = vadd.f32 %v722_v61, %v721_v50  ;;  %v1729_v7 = vld [vmem:[%s2686_s6] ss:$0 sm:$0xff]  ;;  %v2070_v61 = vld [vmem:[%s2685_s9 + $0x134] ss:$8 sps:$4 sm:$0xff]  }
 0x33f   :  { %v771_v46 = vpop.permute.xlu0 %770  ;;  %v755_v47 = vpop.permute.xlu1 %754 }
 0x340   :  { %v773_v48 = vadd.f32 %v771_v46, %v2337_v59  ;;  %v757_v55 = vadd.f32 %v755_v47, %v750_v51  ;;  %v2059_v51 = vld [vmem:[%s2685_s9 + $0x100] ss:$8 sps:$4 sm:$0xff]  }
 0x342   :  { %v774_v54 = vadd.f32 %v773_v48, %v2362_v9  ;;  %v759_v0 = vadd.f32 %v758_v63, %v757_v55  ;;  %v2062_v55 = vld [vmem:[%s2685_s9 + $0x110] ss:$8 sps:$4 sm:$0xff]  }
 0x343   :  { %v743_v56 = vpop.permute.xlu0 %742 }
 0x344   :  { %v745_v57 = vadd.f32 %v743_v56, %v738_v52  ;;  %v779_v58 = vpop.permute.xlu1 %778  ;;  %v828_v56 = vsub.s32 3, %v2541_v36 }
 0x345   :  { %v781_v60 = vadd.f32 %v779_v58, %v774_v54  ;;  %v2064_v54 = vld [vmem:[%s2685_s9 + $0x114] ss:$8 sps:$4 sm:$0xff]  }
 0x346   :  { %v747_v1 = vrot.slane %v745_v57, 2  ;;  %v2067_v57 = vld [vmem:[%s2685_s9 + $0x124] ss:$8 sps:$4 sm:$0xff]   ;;  %v829_v58 = vrot.slane %v2547_v38, %v828_v56 }
 0x347   :  { %v728_v53 = vpop.permute.xlu0 %727  ;;  %v783_v3 = vrot.slane %v781_v60, 2  ;;  %v2065_v60 = vld [vmem:[%s2685_s9 + $0x120] ss:$8 sps:$4 sm:$0xff]  }
 0x348   :  { %v730_v2 = vadd.f32 %v728_v53, %v723_v62  ;;  %v764_v59 = vpop.permute.xlu1 %763 }
 0x349   :  { %v766_v4 = vadd.f32 %v764_v59, %v759_v0  ;;  %v2073_v59 = vld [vmem:[%s2685_s9 + $0x144] ss:$8 sps:$4 sm:$0xff]  }
 0x34a   :  { %v749_v5 = vmax.f32 %v730_v2, %v747_v1  ;;  %v2068_v1 = vld [vmem:[%s2685_s9 + $0x130] ss:$8 sps:$4 sm:$0xff]  }
 0x34b   :  { %v785_v6 = vmax.f32 %v766_v4, %v783_v3 }
 0x34d   :  { %v786_v8 = vmax.f32 %v749_v5, %v785_v6  ;;  %v2071_v5 = vld [vmem:[%s2685_s9 + $0x140] ss:$8 sps:$4 sm:$0xff]   ;;  %v2076_v6 = vld [vmem:[%s2685_s9 + $0x154] ss:$8 sps:$4 sm:$0xff]  }
 0x34f   :  { %v794_v9 = vadd.f32 %v1729_v7, %v786_v8  ;;  %v2074_v7 = vld [vmem:[%s2685_s9 + $0x150] ss:$8 sps:$4 sm:$0xff]   ;;  %v2079_v8 = vld [vmem:[%s2685_s9 + $0x164] ss:$8 sps:$4 sm:$0xff]  }
 0x351   :  { %v795_v11 = vpack.c.bf16 %v794_v9, %v794_v9  ;;  %v2077_v9 = vld [vmem:[%s2685_s9 + $0x160] ss:$8 sps:$4 sm:$0xff]  }
 0x353   :  { %1746 = vmatmul.mubr.msk.bf16.vlgmr.msra.gmra.mrb[28].mxu0 %vm140_vm0, %v795_v11 }
 0x354   :  { %959 = vmatpush1.bf16.msra.mxu0 %v1999_v10  ;;  %990 = vmatprep.mubr.bf16.mxu0 %v2123_v21  ;;  %v2008_v21 = vld [vmem:[%s2684_s7 + $0x68] ss:$16 sps:$4 sm:$0xff]   ;;  %v2082_v10 = vld [vmem:[%s2685_s9 + $0x174] ss:$8 sps:$4 sm:$0xff]  }
 0x355   :  { %960 = vmatprep.subr.bf16.mxu0 %v2004_v12  ;;  %v2085_v12 = vld [vmem:[%s2685_s9 + $0x184] ss:$8 sps:$4 sm:$0xff]  }
 0x358   :  { %961 = vmatpush1.bf16.msra.mxu0 %v2002_v13  ;;  %v2083_v13 = vld [vmem:[%s2685_s9 + $0x180] ss:$8 sps:$4 sm:$0xff]  }
 0x359   :  { %962 = vmatprep.subr.bf16.mxu0 %v2007_v14  ;;  %v2088_v14 = vld [vmem:[%s2685_s9 + $0x194] ss:$8 sps:$4 sm:$0xff]  }
 0x35c   :  { %963 = vmatpush1.bf16.msra.mxu0 %v2005_v15  ;;  %v2086_v15 = vld [vmem:[%s2685_s9 + $0x190] ss:$8 sps:$4 sm:$0xff]  }
 0x35d   :  { %964 = vmatprep.subr.bf16.mxu0 %v2010_v16  ;;  %v2091_v16 = vld [vmem:[%s2685_s9 + $0x1a4] ss:$8 sps:$4 sm:$0xff]  }
 0x360   :  { %965 = vmatpush1.bf16.msra.mxu0 %v2008_v21  ;;  %v2089_v21 = vld [vmem:[%s2685_s9 + $0x1a0] ss:$8 sps:$4 sm:$0xff]  }
 0x361   :  { %1857 = vmatprep.subr.bf16.mxu0 %v2107_v23  ;;  %v2100_v23 = vld [vmem:[%s2685_s9 + $0x1d4] ss:$8 sps:$4 sm:$0xff]  }
 0x363   :  { %1747 = vmatmul.mubr.msk.bf16.vlgmr.msra.gmra.mrb[32].mxu0 %vm140_vm0, %v795_v11  ;;  %v2080_v11 = vld [vmem:[%s2685_s9 + $0x170] ss:$8 sps:$4 sm:$0xff]  }
 0x364   :  { %1858 = vmatpush3.bf16.msra.mxu0 %v2108_v24  ;;  %v2098_v24 = vld [vmem:[%s2685_s9 + $0x1d0] ss:$8 sps:$4 sm:$0xff]  }
 0x365   :  { %1859 = vmatprep.subr.bf16.mxu0 %v2109_v25  ;;  %v825_v25 = vrot.slane %v2547_v38, %v824_v22  ;;  %v2122_v38 = vld [vmem:[%s2687_s11 + $0x38] sm:$0xff]  }
 0x368   :  { %1860 = vmatpush3.bf16.msra.mxu0 %v2110_v26  ;;  %v2103_v26 = vld [vmem:[%s2685_s9 + $0x1e4] ss:$8 sps:$4 sm:$0xff]  }
 0x369   :  { %1861 = vmatprep.subr.bf16.mxu0 %v2111_v27  ;;  %v2101_v27 = vld [vmem:[%s2685_s9 + $0x1e0] ss:$8 sps:$4 sm:$0xff]  }
 0x36c   :  { %1862 = vmatpush3.bf16.msra.mxu0 %v2112_v28 }
 0x36d   :  { %1863 = vmatprep.subr.bf16.mxu0 %v2113_v29  ;;  %v2106_v29 = vld [vmem:[%s2685_s9 + $0x1f4] ss:$8 sps:$4 sm:$0xff]  }
 0x370   :  { %1864 = vmatpush3.bf16.msra.mxu0 %v2114_v30  ;;  %v2104_v30 = vld [vmem:[%s2685_s9 + $0x1f0] ss:$8 sps:$4 sm:$0xff]  }
 0x371   :  { %1865 = vmatprep.subr.bf16.mxu0 %v2115_v31 }
 0x374   :  { %1866 = vmatpush3.bf16.msra.mxu0 %v2116_v32 }
 0x375   :  { %1867 = vmatprep.subr.bf16.mxu0 %v2117_v33  ;;  %v2119_v33 = vld [vmem:[%s2687_s11 + $0x70] sm:$0xff]  }
 0x378   :  { %1868 = vmatpush3.bf16.msra.mxu0 %v2118_v34  ;;  %v2120_v34 = vld [vmem:[%s2687_s11 + $0x30] sm:$0xff]  }
 0x379   :  { %1869 = vmatprep.subr.bf16.mxu0 %v2119_v33 }
 0x37c   :  { %1870 = vmatpush3.bf16.msra.mxu0 %v2120_v34 }
 0x37d   :  { %1871 = vmatprep.subr.bf16.mxu0 %v2121_v35 }
 0x380   :  { %1872 = vmatpush3.bf16.msra.mxu0 %v2122_v38 }
 0x426   :  { %v951_v42 = vpop.f32.mrb[28].mxu0 }
 0x427   :  { %v952_v43 = vadd.f32 %v951_v42, %v817_v40  ;;  %v953_v44 = vpop.f32.mrb[29].mxu0  ;;  %v1071_v40 = vld [vmem:[%s2689_s10] sm:$0x3] }
 0x428   :  { %v954_v45 = vadd.f32 %v953_v44, %v821_v41  ;;  %v955_v46 = vpop.f32.mrb[30].mxu0  ;;  %v1076_v41 = vrot.slane %v1071_v40, %v816_v37  ;;  %v1080_v42 = vrot.slane %v1071_v40, %v820_v39  ;;  %v1812_v37 = vld [vmem:[%s2690_s12] ss:$0 sm:$0xff] }
 0x429   :  { %v999_v47 = vmax.f32 %v952_v43, 0.0  ;;  %v956_v48 = vpop.f32.mrb[31].mxu0 }
 0x42a   :  { %v1000_v49 = vmax.f32 %v954_v45, 0.0 }
 0x42b   :  { %v1003_v52 = vpack.c.bf16 %v999_v47, %v999_v47 }
 0x42c   :  { %v1004_v50 = vpack.c.bf16 %v1000_v49, %v1000_v49 }
 0x42e   :  { %1435 = vmatprep.mubr.bf16.mxu1 %v1004_v50 }
 0x42f   :  { %1436 = vmatmul.mubr.bf16.vlgmr.msra.gmra.mrb[4].mxu1 %v1003_v52 }
 0x430   :  { %1445 = vmatpush1.bf16.msra.mxu1 %v2059_v51 }
 0x431   :  { %1446 = vmatprep.subr.bf16.mxu1 %v2064_v54 }
 0x434   :  { %1447 = vmatpush1.bf16.msra.mxu1 %v2062_v55 }
 0x435   :  { %1448 = vmatprep.subr.bf16.mxu1 %v2067_v57 }
 0x436   :  { %v992_v62 = vpop.f32.mrb[32].mxu0 }
 0x437   :  { %v994_v63 = vpop.f32.mrb[33].mxu0  ;;  %v993_v28 = vadd.f32 %v992_v62, %v825_v25 }
 0x438   :  { %v995_v53 = vadd.f32 %v994_v63, %v829_v58  ;;  %v996_v0 = vpop.f32.mrb[34].mxu0  ;;  %1449 = vmatpush1.bf16.msra.mxu1 %v2065_v60 }
 0x439   :  { %v997_v2 = vpop.f32.mrb[35].mxu0  ;;  %1450 = vmatprep.subr.bf16.mxu1 %v2070_v61  ;;  %v1001_v31 = vmax.f32 %v993_v28, 0.0 }
 0x43a   :  { %v1002_v3 = vmax.f32 %v995_v53, 0.0 }
 0x43b   :  { %v1005_v32 = vpack.c.bf16 %v1001_v31, %v1001_v31 }
 0x43c   :  { %v1006_v4 = vpack.c.bf16 %v1002_v3, %v1002_v3  ;;  %1451 = vmatpush1.bf16.msra.mxu1 %v2068_v1 }
 0x43d   :  { %1452 = vmatprep.subr.bf16.mxu1 %v2073_v59 }
 0x43e   :  { %1476 = vmatprep.mubr.bf16.mxu1 %v1006_v4 }
 0x440   :  { %1453 = vmatpush1.bf16.msra.mxu1 %v2071_v5 }
 0x441   :  { %1454 = vmatprep.subr.bf16.mxu1 %v2076_v6 }
 0x444   :  { %1455 = vmatpush1.bf16.msra.mxu1 %v2074_v7 }
 0x445   :  { %1456 = vmatprep.subr.bf16.mxu1 %v2079_v8 }
 0x448   :  { %1457 = vmatpush1.bf16.msra.mxu1 %v2077_v9 }
 0x449   :  { %1458 = vmatprep.subr.bf16.mxu1 %v2082_v10 }
 0x44c   :  { %1459 = vmatpush1.bf16.msra.mxu1 %v2080_v11 }
 0x44d   :  { %1460 = vmatprep.subr.bf16.mxu1 %v2085_v12 }
 0x450   :  { %1461 = vmatpush1.bf16.msra.mxu1 %v2083_v13 }
 0x451   :  { %1462 = vmatprep.subr.bf16.mxu1 %v2088_v14 }
 0x454   :  { %1463 = vmatpush1.bf16.msra.mxu1 %v2086_v15 }
 0x455   :  { %1464 = vmatprep.subr.bf16.mxu1 %v2091_v16 }
 0x458   :  { %1465 = vmatpush1.bf16.msra.mxu1 %v2089_v21 }
 0x459   :  { %1466 = vmatprep.subr.bf16.mxu1 %v2094_v17 }
 0x45c   :  { %1467 = vmatpush1.bf16.msra.mxu1 %v2092_v18 }
 0x45d   :  { %1468 = vmatprep.subr.bf16.mxu1 %v2097_v19 }
 0x460   :  { %1469 = vmatpush1.bf16.msra.mxu1 %v2095_v20 }
 0x461   :  { %1470 = vmatprep.subr.bf16.mxu1 %v2100_v23 }
 0x464   :  { %1471 = vmatpush1.bf16.msra.mxu1 %v2098_v24 }
 0x465   :  { %1472 = vmatprep.subr.bf16.mxu1 %v2103_v26 }
 0x468   :  { %1473 = vmatpush1.bf16.msra.mxu1 %v2101_v27 }
 0x469   :  { %1474 = vmatprep.subr.bf16.mxu1 %v2106_v29 }
 0x46c   :  { %1475 = vmatpush1.bf16.msra.mxu1 %v2104_v30 }
 0x46f   :  { %1477 = vmatmul.mubr.bf16.vlgmr.msra.gmra.mrb[4].mxu1 %v1005_v32 }
 0x542   :  { %v1478_v43 = vpop.f32.mrb[4].mxu1 }
 0x543   :  { %v1939_v44 = vadd.f32 %v1478_v43, %v1076_v41  ;;  %v1480_v45 = vpop.f32.mrb[5].mxu1 }
 0x544   :  { %v1940_v46 = vadd.f32 %v1480_v45, %v1080_v42  ;;  %v1482_v47 = vpop.f32.mrb[6].mxu1 }
 0x545   :  { %v1485_v48 = vmax.f32 %v1939_v44, 0.0  ;;  %v1483_v49 = vpop.f32.mrb[7].mxu1 }
 0x546   :  { %v1486_v50 = vmax.f32 %v1940_v46, 0.0 }
 0x547   :  { %v1487_v52 = vpack.c.bf16 %v1485_v48, %v1485_v48 }
 0x548   :  { %v1488_v51 = vpack.c.bf16 %v1486_v50, %v1486_v50 }
 0x54a   :  { %1656 = vmatprep.mubr.bf16.mxu0 %v1488_v51 }
 0x54b   :  { %1657 = vmatmul.mubr.bf16.vlgmr.msra.gmra.mrb[36].mxu0 %v1487_v52 }
 0x61e   :  { %v1873_v54 = vpop.f32.mrb[36].mxu0 }
 0x61f   :  { %v1874_v55 = vpop.f32.mrb[37].mxu0 }
 0x620   :  { %v1875_v36 = vadd.f32 %v1874_v55, %v1873_v54  ;;  %v1876_v39 = vpop.f32.mrb[38].mxu0 }
 0x621   :  { %v1877_v56 = vpop.f32.mrb[39].mxu0 }
 0x622   :  { %v1659_v57 = vadd.f32 %v1875_v36, %v1812_v37 }
 0x624   :  { %1664 = vst [vmem:[%s2691_s13] sm:$0x3] %v1659_v57 }

</bundles_post_ra>
